<compile_context>
chip_gen: v5e
topology: v5e:2x2
jax: 0.10.0
libtpu: 0.0.40
codegen_flags: <defaults>
</compile_context>

<pallas_src>
import math
import functools

import jax
import jax.numpy as jnp
from jax.experimental import pallas as pl
from jax.experimental.pallas import tpu as pltpu

LN_EPS = 1e-12
COS_EPS = 1e-8


def _layer_norm(x, gamma, beta, eps=LN_EPS):
    mu = jnp.mean(x, axis=-1, keepdims=True)
    var = jnp.mean((x - mu) ** 2, axis=-1, keepdims=True)
    return (x - mu) * jax.lax.rsqrt(var + eps) * gamma + beta


def _softmax_lastdim(x):
    x = x - jnp.max(x, axis=-1, keepdims=True)
    p = jnp.exp(x)
    return p * pl.reciprocal(jnp.sum(p, axis=-1, keepdims=True), approx=True)


def _pick_tile(full, preferred):
    if full <= preferred or full % preferred != 0:
        return full
    return preferred


# ----------------------------- Pallas kernels ------------------------------

def _embed_ln_kernel(x_ref, g_ref, b_ref, o_ref):
    # x_ref: [1, S, H] summed (word + position + token-type) embeddings
    x = x_ref[0].astype(jnp.float32)
    o_ref[0] = _layer_norm(x, g_ref[...], b_ref[...]).astype(o_ref.dtype)


def _attn_kernel(x_ref, bias_ref,
                 wq_ref, bq_ref, wk_ref, bk_ref, wv_ref, bv_ref,
                 wo_ref, bo_ref, g_ref, beta_ref,
                 o_ref, acc_ref, *, head_dim, tq):
    """Grid (batch, q-tile, head). Accumulates ctx @ Wo_head over the head
    (reduction, last) axis; residual + LN1 at the last head."""
    h_idx = pl.program_id(2)

    @pl.when(h_idx == 0)
    def _init():
        acc_ref[...] = jnp.zeros_like(acc_ref)

    x_full = x_ref[0].astype(jnp.float32)             # [S, H]
    xb_full = x_full.astype(jnp.bfloat16)
    seq_len = x_full.shape[0]
    if tq == seq_len:                                 # static branch
        x_rows = x_full
    else:
        q_idx = pl.program_id(1)
        qs = pl.multiple_of(q_idx * tq, tq)
        x_rows = x_ref[0, pl.ds(qs, tq), :].astype(jnp.float32)   # [tq, H]
    xb_rows = x_rows.astype(jnp.bfloat16)
    bias = bias_ref[0].astype(jnp.float32)            # [1, S] additive mask bias

    # per-head projections (bf16 MXU inputs, f32 accumulation)
    q = jnp.dot(xb_rows, wq_ref[0], preferred_element_type=jnp.float32) + bq_ref[0]
    k = jnp.dot(xb_full, wk_ref[0], preferred_element_type=jnp.float32) + bk_ref[0]
    v = jnp.dot(xb_full, wv_ref[0], preferred_element_type=jnp.float32) + bv_ref[0]

    sc = jax.lax.dot_general(q.astype(jnp.bfloat16), k.astype(jnp.bfloat16),
                             (((1,), (1,)), ((), ())),
                             preferred_element_type=jnp.float32)   # [tq, S]
    sc = sc * (1.0 / math.sqrt(head_dim)) + bias
    p = _softmax_lastdim(sc)

    ctx = jnp.dot(p.astype(jnp.bfloat16), v.astype(jnp.bfloat16),
                  preferred_element_type=jnp.float32)              # [tq, hd]
    acc_ref[...] += jnp.dot(ctx.astype(jnp.bfloat16), wo_ref[0],
                            preferred_element_type=jnp.float32)    # [tq, H]

    @pl.when(h_idx == pl.num_programs(2) - 1)
    def _finalize():
        attn_out = acc_ref[...] + bo_ref[...]
        o_ref[0] = _layer_norm(x_rows + attn_out,
                               g_ref[...], beta_ref[...]).astype(o_ref.dtype)


def _ffn_kernel(x_ref, w1_ref, b1_ref, w2_ref, b2_ref, g_ref, beta_ref,
                o_ref, acc_ref):
    """Grid (batch, row-tile, I-chunk). The [tq, I] intermediate only ever
    exists one chunk at a time; w2 contributions accumulate in VMEM."""
    k_idx = pl.program_id(2)

    @pl.when(k_idx == 0)
    def _init():
        acc_ref[...] = jnp.zeros_like(acc_ref)

    x = x_ref[0].astype(jnp.float32)                               # [tq, H]
    h = jnp.dot(x.astype(jnp.bfloat16), w1_ref[...],
                preferred_element_type=jnp.float32) + b1_ref[...]
    # TODO(synk): HF kcbert uses exact erf GELU; tanh approximation used here.
    h = jax.nn.gelu(h, approximate=True)
    acc_ref[...] += jnp.dot(h.astype(jnp.bfloat16), w2_ref[...],
                            preferred_element_type=jnp.float32)

    @pl.when(k_idx == pl.num_programs(2) - 1)
    def _finalize():
        out = x + acc_ref[...] + b2_ref[...]
        o_ref[0] = _layer_norm(out, g_ref[...], beta_ref[...]).astype(o_ref.dtype)


def _head_kernel(cls_ref, we_ref, wp_ref, bp_ref, wc_ref, bc_ref,
                 logits_ref, attn_ref, cos_ref, *, hidden_size):
    cls_tok = cls_ref[...].astype(jnp.float32)        # [B, H] last-layer [CLS]
    we = we_ref[...].astype(jnp.float32)              # [S-2, H]

    # BERT pooler: tanh(Linear(cls_token))
    pooler = jnp.tanh(
        jnp.dot(cls_tok.astype(jnp.bfloat16), wp_ref[...],
                preferred_element_type=jnp.float32) + bp_ref[...])

    # nn.Dropout(p=0.5) is the identity in eval/inference mode.
    # TODO(synk): training-mode dropout (random mask + 1/(1-p) scaling) not implemented.
    out = pooler

    # Lane-dense packed classifier heads: [B, 128] = [fuck(2) | bad(3) | pad]
    logits_ref[...] = (jnp.dot(out.astype(jnp.bfloat16), wc_ref[...],
                               preferred_element_type=jnp.float32)
                       + bc_ref[...]).astype(logits_ref.dtype)

    cls = pooler[0:1, :]                                              # [1, H]
    dots = jax.lax.dot_general(cls, we, (((1,), (1,)), ((), ())),
                               preferred_element_type=jnp.float32)    # [1, S-2]
    attn_ref[...] = _softmax_lastdim(
        dots * (1.0 / math.sqrt(hidden_size))).astype(attn_ref.dtype)

    # cosine_similarity(cls[1,H], we[S-2,H]) -> [1, S-2]
    ones_row = jnp.ones((1, we.shape[1]), jnp.float32)
    we_sq_row = jax.lax.dot_general(ones_row, we * we, (((1,), (1,)), ((), ())),
                                    preferred_element_type=jnp.float32)
    denom = jnp.sqrt(jnp.sum(cls * cls)) * jnp.sqrt(we_sq_row)
    denom = jnp.maximum(denom, COS_EPS)
    cos_ref[...] = (dots * pl.reciprocal(denom, approx=True)).astype(cos_ref.dtype)


# --------------------------- pallas_call wrappers ---------------------------

def embed_layernorm(x, gamma, beta):
    B, S, H = x.shape
    return pl.pallas_call(
        _embed_ln_kernel,
        out_shape=jax.ShapeDtypeStruct((B, S, H), jnp.float32),
        grid=(B,),
        in_specs=[
            pl.BlockSpec((1, S, H), lambda b: (b, 0, 0)),
            pl.BlockSpec((1, H), lambda b: (0, 0)),
            pl.BlockSpec((1, H), lambda b: (0, 0)),
        ],
        out_specs=pl.BlockSpec((1, S, H), lambda b: (b, 0, 0)),
        compiler_params=pltpu.CompilerParams(dimension_semantics=("parallel",)),
    )(x, gamma, beta)


def encoder_attention(x, mask_bias, lw, *, num_heads, head_dim):
    B, S, H = x.shape
    tq = _pick_tile(S, 256)
    nq = S // tq
    kernel = functools.partial(_attn_kernel, head_dim=head_dim, tq=tq)
    return pl.pallas_call(
        kernel,
        out_shape=jax.ShapeDtypeStruct((B, S, H), jnp.float32),
        grid=(B, nq, num_heads),
        in_specs=[
            pl.BlockSpec((1, S, H), lambda b, q, h: (b, 0, 0)),          # x
            pl.BlockSpec((1, 1, S), lambda b, q, h: (b, 0, 0)),          # mask bias
            pl.BlockSpec((1, H, head_dim), lambda b, q, h: (h, 0, 0)),   # wq_h
            pl.BlockSpec((1, 1, head_dim), lambda b, q, h: (h, 0, 0)),   # bq_h
            pl.BlockSpec((1, H, head_dim), lambda b, q, h: (h, 0, 0)),   # wk_h
            pl.BlockSpec((1, 1, head_dim), lambda b, q, h: (h, 0, 0)),   # bk_h
            pl.BlockSpec((1, H, head_dim), lambda b, q, h: (h, 0, 0)),   # wv_h
            pl.BlockSpec((1, 1, head_dim), lambda b, q, h: (h, 0, 0)),   # bv_h
            pl.BlockSpec((1, head_dim, H), lambda b, q, h: (h, 0, 0)),   # wo_h
            pl.BlockSpec((1, H), lambda b, q, h: (0, 0)),                # bo
            pl.BlockSpec((1, H), lambda b, q, h: (0, 0)),                # ln1_g
            pl.BlockSpec((1, H), lambda b, q, h: (0, 0)),                # ln1_b
        ],
        out_specs=pl.BlockSpec((1, tq, H), lambda b, q, h: (b, q, 0)),
        scratch_shapes=[pltpu.VMEM((tq, H), jnp.float32)],
        compiler_params=pltpu.CompilerParams(
            dimension_semantics=("parallel", "parallel", "arbitrary")),
    )(x, mask_bias, lw["wq_h"], lw["bq_h"], lw["wk_h"], lw["bk_h"],
      lw["wv_h"], lw["bv_h"], lw["wo_h"], lw["bo"], lw["ln1_g"], lw["ln1_b"])


def encoder_ffn(h1, lw):
    B, S, H = h1.shape
    I = lw["w1"].shape[1]
    tq = _pick_tile(S, 256)
    ck = _pick_tile(I, 512)
    nq, nk = S // tq, I // ck
    return pl.pallas_call(
        _ffn_kernel,
        out_shape=jax.ShapeDtypeStruct((B, S, H), jnp.float32),
        grid=(B, nq, nk),
        in_specs=[
            pl.BlockSpec((1, tq, H), lambda b, q, k: (b, q, 0)),   # x (h1)
            pl.BlockSpec((H, ck), lambda b, q, k: (0, k)),         # w1 chunk
            pl.BlockSpec((1, ck), lambda b, q, k: (0, k)),         # b1 chunk
            pl.BlockSpec((ck, H), lambda b, q, k: (k, 0)),         # w2 chunk
            pl.BlockSpec((1, H), lambda b, q, k: (0, 0)),          # b2
            pl.BlockSpec((1, H), lambda b, q, k: (0, 0)),          # ln2_g
            pl.BlockSpec((1, H), lambda b, q, k: (0, 0)),          # ln2_b
        ],
        out_specs=pl.BlockSpec((1, tq, H), lambda b, q, k: (b, q, 0)),
        scratch_shapes=[pltpu.VMEM((tq, H), jnp.float32)],
        compiler_params=pltpu.CompilerParams(
            dimension_semantics=("parallel", "parallel", "arbitrary")),
    )(h1, lw["w1"], lw["b1"], lw["w2"], lw["b2"], lw["ln2_g"], lw["ln2_b"])


def classifier_head(cls_tok, word_emb, hp, *, hidden_size):
    B, _ = cls_tok.shape
    N = word_emb.shape[0]

    def fs(shape):
        nd = len(shape)
        return pl.BlockSpec(shape, lambda i, nd=nd: (0,) * nd)

    kernel = functools.partial(_head_kernel, hidden_size=hidden_size)
    logits, attn, cos = pl.pallas_call(
        kernel,
        out_shape=(jax.ShapeDtypeStruct((B, 128), jnp.float32),
                   jax.ShapeDtypeStruct((1, N), jnp.float32),
                   jax.ShapeDtypeStruct((1, N), jnp.float32)),
        grid=(1,),
        in_specs=[fs(cls_tok.shape), fs(word_emb.shape),
                  fs(hp["pooler_w"].shape), fs(hp["pooler_b"].shape),
                  fs(hp["cls_w"].shape), fs(hp["cls_b"].shape)],
        out_specs=(fs((B, 128)), fs((1, N)), fs((1, N))),
    )(cls_tok, word_emb, hp["pooler_w"], hp["pooler_b"], hp["cls_w"], hp["cls_b"])
    return logits[:, 0:2], logits[:, 2:5], attn, cos


# ------------------------------- model glue ---------------------------------

def init_params(key, *, vocab_size, max_seq, hidden_size, num_layers, intermediate_size):
    def nrm(k, shape, scale=0.02):
        return scale * jax.random.normal(k, shape, dtype=jnp.float32)

    keys = jax.random.split(key, 8 + num_layers)
    H, I = hidden_size, intermediate_size
    params = {
        "word_emb": nrm(keys[0], (vocab_size, H)),
        "pos_emb": nrm(keys[1], (max_seq, H)),
        "tok_type_emb": nrm(keys[2], (2, H)),
        "emb_ln_g": jnp.ones((1, H), jnp.float32),
        "emb_ln_b": jnp.zeros((1, H), jnp.float32),
        "pooler_w": nrm(keys[3], (H, H)),
        "pooler_b": jnp.zeros((1, H), jnp.float32),
        "fuck_w": nrm(keys[4], (H, 2)),       # nn.Linear(hidden_size, 2)
        "fuck_b": jnp.zeros((1, 2), jnp.float32),
        "bad_w": nrm(keys[5], (H, 3)),        # nn.Linear(hidden_size, 3)
        "bad_b": jnp.zeros((1, 3), jnp.float32),
        "layers": [],
    }
    for li in range(num_layers):
        lk = jax.random.split(keys[8 + li], 6)
        params["layers"].append({
            "wq": nrm(lk[0], (H, H)), "bq": jnp.zeros((1, H), jnp.float32),
            "wk": nrm(lk[1], (H, H)), "bk": jnp.zeros((1, H), jnp.float32),
            "wv": nrm(lk[2], (H, H)), "bv": jnp.zeros((1, H), jnp.float32),
            "wo": nrm(lk[3], (H, H)), "bo": jnp.zeros((1, H), jnp.float32),
            "ln1_g": jnp.ones((1, H), jnp.float32), "ln1_b": jnp.zeros((1, H), jnp.float32),
            "w1": nrm(lk[4], (H, I)), "b1": jnp.zeros((1, I), jnp.float32),
            "w2": nrm(lk[5], (I, H)), "b2": jnp.zeros((1, H), jnp.float32),
            "ln2_g": jnp.ones((1, H), jnp.float32), "ln2_b": jnp.zeros((1, H), jnp.float32),
        })
    return params


def prepare_kernel_params(params, cfg):
    """Cast/reshape weights at the pallas_call boundary: bf16 for big matrices,
    head-major [nh, H, hd] / [nh, hd, H] layout for attention weights, and the
    two classifier heads packed into one lane-dense [H, 128] matrix."""
    H = cfg["hidden_size"]
    nh, hd = cfg["num_heads"], cfg["head_dim"]

    def head_major_in(w):   # [H, H] -> [nh, H, hd]  (output columns per head)
        return jnp.transpose(w.reshape(H, nh, hd), (1, 0, 2)).astype(jnp.bfloat16)

    def head_major_bias(b):  # [1, H] -> [nh, 1, hd]
        return b.reshape(nh, hd)[:, None, :].astype(jnp.float32)

    layers = []
    for lp in params["layers"]:
        layers.append({
            "wq_h": head_major_in(lp["wq"]), "bq_h": head_major_bias(lp["bq"]),
            "wk_h": head_major_in(lp["wk"]), "bk_h": head_major_bias(lp["bk"]),
            "wv_h": head_major_in(lp["wv"]), "bv_h": head_major_bias(lp["bv"]),
            "wo_h": lp["wo"].reshape(nh, hd, H).astype(jnp.bfloat16),
            "bo": lp["bo"], "ln1_g": lp["ln1_g"], "ln1_b": lp["ln1_b"],
            "w1": lp["w1"].astype(jnp.bfloat16), "b1": lp["b1"],
            "w2": lp["w2"].astype(jnp.bfloat16), "b2": lp["b2"],
            "ln2_g": lp["ln2_g"], "ln2_b": lp["ln2_b"],
        })

    cls_w = jnp.zeros((H, 128), jnp.float32)
    cls_w = cls_w.at[:, 0:2].set(params["fuck_w"]).at[:, 2:5].set(params["bad_w"])
    cls_b = jnp.zeros((1, 128), jnp.float32)
    cls_b = cls_b.at[:, 0:2].set(params["fuck_b"]).at[:, 2:5].set(params["bad_b"])
    head = {
        "pooler_w": params["pooler_w"].astype(jnp.bfloat16),
        "pooler_b": params["pooler_b"],
        "cls_w": cls_w.astype(jnp.bfloat16),
        "cls_b": cls_b,
    }
    return {"layers": layers, "head": head}


def bert_classifier_forward(params, input_ids, token_type_ids, attention_mask, *, cfg):
    B, S = input_ids.shape
    input_ids = input_ids.astype(jnp.int32)
    token_type_ids = token_type_ids.astype(jnp.int32)
    attention_mask = attention_mask.astype(jnp.int32)

    kparams = prepare_kernel_params(params, cfg)

    # Embedding lookups (gather = glue), then layernorm in a Pallas kernel.
    emb = (params["word_emb"][input_ids]
           + params["tok_type_emb"][token_type_ids]
           + params["pos_emb"][None, :S, :])
    hidden0 = embed_layernorm(emb, params["emb_ln_g"], params["emb_ln_b"])  # hidden_states[0]

    # HF-style additive attention-mask bias, shaped [B, 1, S].
    mask_bias = ((1.0 - attention_mask.astype(jnp.float32)) * -10000.0)[:, None, :]

    h = hidden0
    for lw in kparams["layers"]:
        h1 = encoder_attention(h, mask_bias, lw,
                               num_heads=cfg["num_heads"], head_dim=cfg["head_dim"])
        h = encoder_ffn(h1, lw)

    cls_tok = h[:, 0, :]                     # [B, H] last-layer [CLS] (glue slice)
    word_embedding = hidden0[0, 1:-1, :]     # [S-2, H] == hidden_states[0][0, 1:-1]

    fuck_logits, bad_logits, attn_prob, cosine_sim = classifier_head(
        cls_tok, word_embedding, kparams["head"], hidden_size=cfg["hidden_size"])

    # Match PyTorch: attention_prob is 1-D, cosine_sim is [1, S-2].
    return fuck_logits, bad_logits, (attn_prob[0], cosine_sim)


if __name__ == "__main__":
    B, S, H = 2, 8, 32
    NUM_HEADS, HEAD_DIM = 4, 8
    INTER = 4 * H
    VOCAB = 64
    NUM_LAYERS = 2
    cfg = dict(hidden_size=H, num_heads=NUM_HEADS, head_dim=HEAD_DIM)

    key = jax.random.PRNGKey(0)
    pkey, ikey = jax.random.split(key)
    params = init_params(pkey, vocab_size=VOCAB, max_seq=S, hidden_size=H,
                         num_layers=NUM_LAYERS, intermediate_size=INTER)

    input_ids = jax.random.randint(ikey, (B, S), 0, VOCAB, dtype=jnp.int32)
    token_type_ids = jnp.zeros((B, S), jnp.int32)
    attention_mask = jnp.ones((B, S), jnp.int32)

    outs = bert_classifier_forward(params, input_ids, token_type_ids,
                                   attention_mask, cfg=cfg)
    jax.block_until_ready(outs)

    fuck_logits, bad_logits, (attn_prob, cosine_sim) = outs
    assert fuck_logits.shape == (B, 2)
    assert bad_logits.shape == (B, 3)
    assert attn_prob.shape == (S - 2,)
    assert cosine_sim.shape == (1, S - 2)
    assert bool(jnp.all(jnp.isfinite(fuck_logits)))
    assert bool(jnp.all(jnp.isfinite(cosine_sim)))
    print("KERNEL_OK")
</pallas_src>

<mosaic_0001>
module attributes {stable_mosaic.version = 11 : i64} {
  func.func @_embed_ln_kernel(%arg0: i32, %arg1: memref<1x8x32xf32, #tpu.memory_space<vmem>>, %arg2: memref<1x32xf32, #tpu.memory_space<vmem>>, %arg3: memref<1x32xf32, #tpu.memory_space<vmem>>, %arg4: memref<1x8x32xf32, #tpu.memory_space<vmem>>) attributes {dimension_semantics = [#tpu.dimension_semantics<parallel>], iteration_bounds = array<i64: 2>, scalar_prefetch = 0 : i64, scratch_operands = 0 : i64, tpu.core_type = #tpu.core_type<tc>, window_params = [{transform_indices = @transform_0, window_bounds = array<i64: 1, 8, 32>}, {pipeline_mode = #tpu.pipeline_mode<synchronous>, transform_indices = @transform_1, window_bounds = array<i64: 1, 32>}, {pipeline_mode = #tpu.pipeline_mode<synchronous>, transform_indices = @transform_2, window_bounds = array<i64: 1, 32>}, {transform_indices = @transform_3, window_bounds = array<i64: 1, 8, 32>}]} {
    %c0 = arith.constant 0 : index
    %c0_0 = arith.constant 0 : index
    %c0_1 = arith.constant 0 : index
    %0 = vector.load %arg1[%c0, %c0_0, %c0_1] : memref<1x8x32xf32, #tpu.memory_space<vmem>>, vector<1x8x32xf32>
    %1 = vector.shape_cast %0 : vector<1x8x32xf32> to vector<8x32xf32>
    %c0_2 = arith.constant 0 : index
    %c0_3 = arith.constant 0 : index
    %2 = vector.load %arg2[%c0_2, %c0_3] : memref<1x32xf32, #tpu.memory_space<vmem>>, vector<1x32xf32>
    %c0_4 = arith.constant 0 : index
    %c0_5 = arith.constant 0 : index
    %3 = vector.load %arg3[%c0_4, %c0_5] : memref<1x32xf32, #tpu.memory_space<vmem>>, vector<1x32xf32>
    %cst = arith.constant dense<0.000000e+00> : vector<8xf32>
    %4 = vector.multi_reduction <add>, %1, %cst [1] : vector<8x32xf32> to vector<8xf32>
    %5 = vector.shape_cast %4 : vector<8xf32> to vector<8x1xf32>
    %cst_6 = arith.constant 3.200000e+01 : f32
    %6 = vector.broadcast %cst_6 : f32 to vector<8x1xf32>
    %7 = arith.divf %5, %6 : vector<8x1xf32>
    %8 = vector.broadcast %7 : vector<8x1xf32> to vector<8x32xf32>
    %9 = arith.subf %1, %8 : vector<8x32xf32>
    %10 = arith.mulf %9, %9 : vector<8x32xf32>
    %cst_7 = arith.constant dense<0.000000e+00> : vector<8xf32>
    %11 = vector.multi_reduction <add>, %10, %cst_7 [1] : vector<8x32xf32> to vector<8xf32>
    %12 = vector.shape_cast %11 : vector<8xf32> to vector<8x1xf32>
    %cst_8 = arith.constant 3.200000e+01 : f32
    %13 = vector.broadcast %cst_8 : f32 to vector<8x1xf32>
    %14 = arith.divf %12, %13 : vector<8x1xf32>
    %15 = vector.broadcast %7 : vector<8x1xf32> to vector<8x32xf32>
    %16 = arith.subf %1, %15 : vector<8x32xf32>
    %cst_9 = arith.constant 9.99999996E-13 : f32
    %17 = vector.broadcast %cst_9 : f32 to vector<8x1xf32>
    %18 = arith.addf %14, %17 : vector<8x1xf32>
    %19 = math.rsqrt %18 : vector<8x1xf32>
    %20 = vector.broadcast %19 : vector<8x1xf32> to vector<8x32xf32>
    %21 = arith.mulf %16, %20 : vector<8x32xf32>
    %22 = vector.broadcast %2 : vector<1x32xf32> to vector<8x32xf32>
    %23 = arith.mulf %21, %22 : vector<8x32xf32>
    %24 = vector.broadcast %3 : vector<1x32xf32> to vector<8x32xf32>
    %25 = arith.addf %23, %24 : vector<8x32xf32>
    %c0_10 = arith.constant 0 : index
    %c0_11 = arith.constant 0 : index
    %c0_12 = arith.constant 0 : index
    %26 = vector.load %arg4[%c0_10, %c0_11, %c0_12] : memref<1x8x32xf32, #tpu.memory_space<vmem>>, vector<1x8x32xf32>
    %27 = vector.shape_cast %26 : vector<1x8x32xf32> to vector<8x32xf32>
    %28 = vector.shape_cast %25 : vector<8x32xf32> to vector<1x8x32xf32>
    tpu.vector_store %arg4[%c0_10, %c0_11, %c0_12], %28 {strides = array<i32>} : memref<1x8x32xf32, #tpu.memory_space<vmem>>, vector<1x8x32xf32>,
    return
  }
  func.func @transform_0(%arg0: i32) -> (i32, i32, i32) {
    %c0_i32 = arith.constant 0 : i32
    %c0_i32_0 = arith.constant 0 : i32
    %c0_i32_1 = arith.constant 0 : i32
    return %arg0, %c0_i32, %c0_i32_0 : i32, i32, i32
  }
  func.func @transform_1(%arg0: i32) -> (i32, i32) {
    %c0_i32 = arith.constant 0 : i32
    %c0_i32_0 = arith.constant 0 : i32
    %c0_i32_1 = arith.constant 0 : i32
    return %c0_i32, %c0_i32_0 : i32, i32
  }
  func.func @transform_2(%arg0: i32) -> (i32, i32) {
    %c0_i32 = arith.constant 0 : i32
    %c0_i32_0 = arith.constant 0 : i32
    %c0_i32_1 = arith.constant 0 : i32
    return %c0_i32, %c0_i32_0 : i32, i32
  }
  func.func @transform_3(%arg0: i32) -> (i32, i32, i32) {
    %c0_i32 = arith.constant 0 : i32
    %c0_i32_0 = arith.constant 0 : i32
    %c0_i32_1 = arith.constant 0 : i32
    return %arg0, %c0_i32, %c0_i32_0 : i32, i32, i32
  }
}

</mosaic_0001>

<bundles_post_ra>
// kernel: tpu_custom_call.1
= control target key start
LH: loop header
LB: loop body
LE: loop exit
PB: predicated region body
PF: predicated region fallthrough
CT: control target
= control target key end

     0   :  { %8 = vsyncpa [#allocation3], 0  ;;  %s721_s0 = inlined_call_operand.hbm [shape: f32[2,8,32], index: 0, kind: input, shape index: {}]   ;;  %s722_s1 = inlined_call_operand.hbm [shape: f32[1,32], index: 1, kind: input, shape index: {}]   ;;  %s723_s2 = inlined_call_operand.vmem [shape: f32[1,32], index: 2, kind: input, shape index: {}]   ;;  %s724_s3 = inlined_call_operand.hbm [shape: f32[2,8,32], index: 3, kind: output, shape index: {}]  }
   0x1   :  { %10 = vsyncpa [#allocation3 + $0x1], 0 }
   0x2   :  { %11 = vsyncpa [#allocation6], 0 }
   0x3   :  { %12 = vsyncpa [#allocation4], 0 }
   0x4   :  { %14 = vsyncpa [#allocation4 + $0x1], 0  ;;  %s573_s12 = smov 0   ;;  %s575_s13 = smov 0  }
   0x5   :  { %s577_s14 = smov 0   ;;  %s579_s15 = smov 0  }
   0x6 LB: > { %s594_s16 = sadd.s32 4294967295, %s549_s15   ;;  %s341_s17 = sadd.s32 4294967294, %s549_s15   ;;  %s549_s15 = sphi %s579_s15, %s734_s15   ;;  %s545_s14 = sphi %s577_s14, %s733_s14   ;;  %s541_s13 = sphi %s575_s13, %s732_s13   ;;  %s537_s12 = sphi %s573_s12, %s731_s12  }
   0x7   : > { %p40_p0 = scmp.ne.s32.totalorder %s541_s13, %s537_s12  ;;  %p41_p1 = scmp.eq.s32.totalorder %s594_s16, 0 }
   0x8   : > { %p106_p2 = scmp.eq.s32.totalorder %s594_s16, 1  ;;  %p112_p3 = scmp.eq.s32.totalorder %s341_s17, 1 }
   0x9   : > { %p603_p4 = por %p41_p1, %p40_p0  ;;  %p342_p5 = scmp.ge.s32.totalorder %s549_s15, 1 }
   0xa   : > { %p608_p6 = por %p112_p3, %p40_p0  ;;  %p119_p7 = scmp.lt.s32.totalorder %s549_s15, 3 }
   0xb   : > { %s131_s22 = sshll.u32 %s722_s1, 4  ;;  %s551_s24 = smov [#allocation5]   ;;  %s132_s22 = int_to_ptr.hbm [resolvable:$true] %s131_s22 }
   0xc   : > { %p616_p8 = pnand %p342_p5, %p119_p7  ;;  %s133_s25 = sshll.u32 %s551_s24, 4  ;;  %s134_s25 = int_to_ptr.vmem [resolvable:$true] %s133_s25 }
   0xd   : > { %s626_s26 = sadd.s32 1, %s549_s15   ;;  %s27_s27 = sadd.s32 1, %s545_s14 }
   0xe   : > { %p363_p10 = pneg %p616_p8  ;;  %s24_s28 = ssub.s32 %s549_s15, %s626_s26 }
   0xf   : > { %p25_p12 = scmp.eq.s32.totalorder %s24_s28, 0  ;;  %p34_p13 = scmp.ne.s32.totalorder %s545_s14, %s541_s13 }
  0x10   : > { %p364_p11 = pnand %p363_p10, %p41_p1  ;;  %p35_p0 = scmp.eq.s32.totalorder %s549_s15, 0 }
  0x11   : > { %s635_s29 = scalar_select %p25_p12, %s545_s14, %s27_s27  }
  0x12   : > { %366 = dma.hbm_to_vmem [thread:$0]  (!%p364_p11), %s132_s22, 16, %s134_s25, [#allocation6]  }
  0x13   : > { %p639_p3 = por %p106_p2, %p34_p13  ;;  %p376_p5 = scmp.lt.s32.totalorder %s549_s15, 2 }
  0x14   : > { %s147_s4 = sand.u32 1, %s545_s14   ;;  %s346_s5 = sshll.u32 %s549_s15, 3 }
  0x15   : > { %p36_p7 = por %p35_p0, %p34_p13  ;;  %s345_s6 = sshll.u32 %s147_s4, 3 }
  0x16   : > { %s155_s9 = scalar_lea.hbm %s721_s0, %s346_s5  ;;  %s151_s11 = scalar_lea.vmem [#allocation2], %s345_s6 }
  0x17   : > { %s157_s10 = sshll.u32 %s155_s9, 4  ;;  %s159_s17 = sshll.u32 %s151_s11, 4  ;;  %s158_s10 = int_to_ptr.hbm [resolvable:$true] %s157_s10  ;;  %s160_s17 = int_to_ptr.vmem [resolvable:$true] %s159_s17 }
  0x18   : > { %p649_p10 = pnand %p376_p5, %p36_p7  ;;  %s148_s21 = scalar_lea.sflag [#allocation3], %s147_s4 }
  0x19   : > { %s449_s22 = sshra.s32 %s158_s10, 4  ;;  %s456_s28 = scalar_lea.hbm %s721_s0, 16  ;;  %s450_s22 = int_to_ptr.hbm [resolvable:$true] %s449_s22 }
  0x1a   : > { %s451_s24 = scalar_lea.hbm %s450_s22, 8  ;;  %p453_p11 = pneg %p649_p10 }
  0x1b   : > { %p452_p2 = scmp.ne.s32.totalorder %s450_s22, %s451_s24  ;;  %p457_p0 = scmp.lt.s32.totalorder %s450_s22, %s721_s0 }
  0x1c   : > { %p458_p5 = scmp.lt.s32.totalorder %s456_s28, %s451_s24 }
  0x1d   : > { %p454_p12 = pnand %p453_p11, %p452_p2 }
  0x1e   : > { %p459_p7 = por %p458_p5, %p457_p0 }
  0x1f   : > { %p455_p13 = pneg %p454_p12 }
  0x21   : > { %p460_p9 = pnand %p459_p7, %p455_p13 }
  0x23   : > { %463 = shalt.err (!%p460_p9)
}
  0x24   : > { %370 = dma.hbm_to_vmem [thread:$0]  (!%p649_p10), %s158_s10, 128, %s160_s17, %s148_s21  }
  0x25   : > { %168 = sbr.rel (%p616_p8) target bundleno = 317 (0x13d), region = 32  ;;  %s666_s4 = sand.u32 (!%p616_p8), 1, %s541_s13  }
  0x26   : > { %s348_s7 = sshll.u32 (!%p616_p8), %s666_s4, 3  ;;  %s171_s8 = scalar_lea.sflag (!%p616_p8), [#allocation3], %s666_s4 }
  0x27   : > { %s174_s9 = scalar_lea.vmem (!%p616_p8), [#allocation2], %s348_s7 }
  0x2a   : > { %524 = dma.done.wait (%p603_p4), %s171_s8, 128  }
  0x2b   : > { %526 = vsyncadd (%p603_p4), %s171_s8, 4294967168 }
  0x2c   : > { %528 = dma.done.wait (%p41_p1), [#allocation6], 16  }
  0x2d   : > { %530 = vsyncadd (%p41_p1), [#allocation6], 4294967280  ;;  %vm206_vm0 = vcmask 261120   ;;  %v203_v0 = vld [vmem:[%s174_s9] sm:$0xff]  ;;  %v552_v2 = vmov 32.0   ;;  %s352_s18 = sshll.u32 %s594_s16, 3 }
  0x2e   : > { %v207_v1 = vsel %vm206_vm0, %v203_v0, 0.0  ;;  %415 = vrcp.f32 %v552_v2  ;;  %v413_v23 = vld [vmem:[#allocation5] ss:$0 sm:$0xff]  ;;  %s256_s11 = scalar_lea.hbm %s724_s3, %s352_s18  ;;  %v414_v26 = vld [vmem:[%s723_s2] ss:$0 sm:$0xff]  ;;  %s202_s21 = scalar_lea.vmem [#allocation7], %s348_s7 }
  0x2f   : > { %208 = vadd.xlane.f32.xlu0 %v207_v1  ;;  %s258_s22 = sshll.u32 %s202_s21, 4  ;;  %s260_s16 = sshll.u32 %s256_s11, 4  ;;  %s259_s22 = int_to_ptr.vmem [resolvable:$true] %s258_s22  ;;  %s261_s16 = int_to_ptr.hbm [resolvable:$true] %s260_s16 }
  0x30   : > { %s246_s24 = scalar_lea.sflag [#allocation4], %s666_s4  ;;  %s493_s25 = sshra.s32 %s261_s16, 4  ;;  %s494_s25 = int_to_ptr.hbm [resolvable:$true] %s493_s25 }
  0x31   : > { %s495_s27 = scalar_lea.hbm %s494_s25, 8  ;;  %s499_s6 = scalar_lea.hbm %s724_s3, 16 }
  0x32   : > { %p496_p1 = scmp.ne.s32.totalorder %s494_s25, %s495_s27  ;;  %p500_p9 = scmp.lt.s32.totalorder %s494_s25, %s724_s3 }
  0x33   : > { %p501_p10 = scmp.lt.s32.totalorder %s499_s6, %s495_s27 }
  0x34   : > { %v416_v3 = vpop.eup %415  ;;  %p497_p4 = pnand %p496_p1, %p639_p3 }
  0x35   : > { %v211_v4 = vmul.f32 32.0, %v416_v3  ;;  %vm215_vm1 = vweird.f32 %v416_v3  ;;  %p502_p2 = por %p501_p10, %p500_p9 }
  0x36   : > { %p498_p8 = pneg %p497_p4 }
  0x37   : > { %v212_v5 = vsub.f32 1.0, %v211_v4 }
  0x38   : > { %p503_p11 = pnand %p502_p2, %p498_p8 }
  0x39   : > { %v213_v6 = vmul.f32 %v416_v3, %v212_v5 }
  0x3b   : > { %v214_v7 = vadd.f32 %v416_v3, %v213_v6 }
  0x3d   : > { %v216_v8 = vsel %vm215_vm1, %v416_v3, %v214_v7 }
  0xa2   : > { %v209_v9 = vpop.xlane.xlu0 %208 }
  0xa3   : > { %v217_v10 = vmul.f32 %v216_v8, %v209_v9 }
  0xa5   : > { %v218_v11 = vsub.f32 %v203_v0, %v217_v10 }
  0xa7   : > { %v219_v12 = vmul.f32 %v218_v11, %v218_v11 }
  0xa9   : > { %v220_v13 = vsel %vm206_vm0, %v219_v12, 0.0 }
  0xaa   : > { %221 = vadd.xlane.f32.xlu0 %v220_v13 }
 0x11d   : > { %v222_v14 = vpop.xlane.xlu0 %221 }
 0x11e   : > { %v223_v15 = vmul.f32 %v222_v14, %v216_v8 }
 0x120   : > { %v224_v16 = vadd.f32 1e-12, %v223_v15 }
 0x122   : > { %417 = vrsqrt.f32 %v224_v16  ;;  %vm231_vm3 = vweird.f32 %v224_v16 }
 0x128   : > { %v418_v17 = vpop.eup %417 }
 0x129   : > { %v226_v18 = vmul.f32 %v418_v17, %v224_v16  ;;  %vm232_vm2 = vweird.f32 %v418_v17 }
 0x12a   : > { %vm233_vm4 = vmor %vm231_vm3, %vm232_vm2 }
 0x12b   : > { %v227_v19 = vmul.f32 %v418_v17, %v226_v18 }
 0x12d   : > { %v228_v20 = vmul.f32 0.5, %v227_v19 }
 0x12f   : > { %v229_v21 = vsub.f32 1.5, %v228_v20 }
 0x131   : > { %v230_v22 = vmul.f32 %v418_v17, %v229_v21 }
 0x133   : > { %v234_v24 = vsel %vm233_vm4, %v418_v17, %v230_v22 }
 0x134   : > { %v235_v25 = vmul.f32 %v234_v24, %v218_v11 }
 0x136   : > { %v239_v27 = vmul.f32 %v413_v23, %v235_v25 }
 0x138   : > { %v243_v28 = vadd.f32 %v414_v26, %v239_v27 }
 0x13a   : > { %244 = vst.msk [vmem:[%s202_s21] sm:$0xff] %vm206_vm0, %v243_v28 }
 0x13b   : > { %506 = shalt.err (!%p503_p11)
}
 0x13c   : > { %361 = dma.vmem_to_hbm [thread:$0]  (%p639_p3), %s259_s22, 128, %s261_s16, %s246_s24  }
 0x13d PF: > { %s272_s4 = sand.u32 1, %s537_s12   ;;  %p730_p12 = scmp.ge.s32.totalorder %s549_s15, 2 }
 0x13e   : > { %s273_s9 = scalar_lea.sflag [#allocation4], %s272_s4 }
 0x13f   : > { %p372_p13 = pnand %p730_p12, %p608_p6 }
 0x141   : > { %p373_p0 = pneg %p372_p13 }
 0x143   : > { %532 = dma.done.wait (%p373_p0), %s273_s9, 128  }
 0x144   : > { %534 = vsyncadd (%p373_p0), %s273_s9, 4294967168  ;;  %p17_p5 = scmp.ge.s32.totalorder %s626_s26, 4   ;;  %s731_s12 = smov %s541_s13 }
 0x145   : > { %s732_s13 = smov %s545_s14  ;;  %s733_s14 = smov %s635_s29 }
 0x146   : > { %s734_s15 = smov %s626_s26  ;;  %19 = sbr.rel (!%p17_p5) target bundleno = 6 (0x6), region = 81 }
 0x14b   :  { %279 = vsyncpa [#allocation3], 1 }
 0x14c   :  { %281 = vsyncpa [#allocation3 + $0x1], 1 }
 0x14d   :  { %282 = vsyncpa [#allocation6], 1 }
 0x14e   :  { %283 = vsyncpa [#allocation4], 1 }
 0x14f   :  { %285 = vsyncpa [#allocation4 + $0x1], 1 }

</bundles_post_ra>
